<compile_context>
chip_gen: v7x
topology: tpu7x:2x2x1
jax: 0.10.0
libtpu: 0.0.40
codegen_flags: <defaults>
</compile_context>

<pallas_src>
import functools

import jax
import jax.numpy as jnp
from jax import lax
from jax.experimental import pallas as pl
from jax.experimental.pallas import tpu as pltpu

D_MODEL = 384
N_HEADS = 6
D_HEAD = D_MODEL // N_HEADS  # 64
BLOCK_SIZE = 256
DROPOUT = 0.1  # TODO(synk): dropout is identity in eval mode; train-mode RNG masking not implemented.

_NEG_INF = -1e30  # large finite negative for the causal mask


def _attention_head_kernel(x_ref, wqkv_ref, o_ref, *, d_model, d_head):
    # x_ref:    (Bb, T, C)        bf16 block of `Bb` batch elements
    # wqkv_ref: (C, 3*d_head)     bf16 fused [Wq | Wk | Wv]
    # o_ref:    (Bb, T, d_head)   f32 output block
    Bb, T, C = x_ref.shape

    # ---- fused QKV projection: one (Bb*T, C) @ (C, 3*d_head) matmul ----
    x2 = x_ref[...].reshape(Bb * T, C)                               # bf16
    qkv = jnp.dot(x2, wqkv_ref[...],
                  preferred_element_type=jnp.float32)                # (Bb*T, 3*d_head) f32
    qkv = qkv.reshape(Bb, T, 3 * d_head)
    q = qkv[:, :, 0:d_head]
    k = qkv[:, :, d_head:2 * d_head]
    v = qkv[:, :, 2 * d_head:3 * d_head]

    # ---- scaled scores: batched q @ k^T without materializing k.T ----
    # NOTE: reference scales by C**-0.5 (d_model, not d_head) — reproduced exactly.
    scale = jnp.float32(d_model) ** -0.5
    wei = lax.dot_general(
        q.astype(jnp.bfloat16), k.astype(jnp.bfloat16),
        dimension_numbers=(((2,), (2,)), ((0,), (0,))),
        preferred_element_type=jnp.float32) * scale                  # (Bb, T, T)

    # ---- causal mask (built once per grid step, broadcast over Bb) ----
    row = lax.broadcasted_iota(jnp.int32, (T, T), 0)
    col = lax.broadcasted_iota(jnp.int32, (T, T), 1)
    wei = jnp.where((col <= row)[None, :, :], wei, jnp.float32(_NEG_INF))

    # ---- softmax over the key dim (f32) ----
    wei = wei - jnp.max(wei, axis=-1, keepdims=True)
    wei = jnp.exp(wei)
    wei = wei * pl.reciprocal(jnp.sum(wei, axis=-1, keepdims=True), approx=True)

    # (dropout is identity at inference time)

    # ---- probs @ V ----
    out = lax.dot_general(
        wei.astype(jnp.bfloat16), v.astype(jnp.bfloat16),
        dimension_numbers=(((2,), (1,)), ((0,), (0,))),
        preferred_element_type=jnp.float32)                          # (Bb, T, d_head)
    o_ref[...] = out.astype(o_ref.dtype)


def _pick_block_batch(B):
    # Batch several elements per grid step, but keep grid extent >= 2 so a
    # v7x megacore (2 TensorCores) stays fully occupied.
    for bb in (8, 4, 2):
        if B % bb == 0 and B // bb >= 2:
            return bb
    return 1


def attention_head(x, wq, wk, wv, *, block_batch=None):
    """x: (B, T, C) float32; wq/wk/wv: (C, D_HEAD) float32. Returns (B, T, D_HEAD) f32."""
    B, T, C = x.shape
    d_head = wq.shape[1]
    if block_batch is None:
        block_batch = _pick_block_batch(B)
    assert B % block_batch == 0, (B, block_batch)

    # Fuse the projection weights and cast matmul operands to bf16
    # (f32 accumulation happens inside the kernel).
    w_qkv = jnp.concatenate([wq, wk, wv], axis=1).astype(jnp.bfloat16)  # (C, 3*d_head)
    x_bf16 = x.astype(jnp.bfloat16)

    kernel = functools.partial(_attention_head_kernel, d_model=C, d_head=d_head)
    return pl.pallas_call(
        kernel,
        out_shape=jax.ShapeDtypeStruct((B, T, d_head), jnp.float32),
        grid_spec=pltpu.PrefetchScalarGridSpec(
            num_scalar_prefetch=0,
            grid=(B // block_batch,),
            in_specs=[
                pl.BlockSpec((block_batch, T, C), lambda b: (b, 0, 0)),
                pl.BlockSpec((C, 3 * d_head), lambda b: (0, 0)),
            ],
            out_specs=pl.BlockSpec((block_batch, T, d_head), lambda b: (b, 0, 0)),
        ),
        compiler_params=pltpu.CompilerParams(
            dimension_semantics=("parallel",)),
    )(x_bf16, w_qkv)


def _reference(x, wq, wk, wv):
    # Pure-JAX f32 reference mirroring the PyTorch forward (eval mode).
    B, T, C = x.shape
    q = x @ wq
    k = x @ wk
    v = x @ wv
    wei = jnp.einsum("btd,bsd->bts", q, k) * (C ** -0.5)
    mask = jnp.tril(jnp.ones((T, T), dtype=bool))
    wei = jnp.where(mask, wei, -jnp.inf)
    wei = jax.nn.softmax(wei, axis=-1)
    return jnp.einsum("bts,bsd->btd", wei, v)


if __name__ == "__main__":
    B, T, C = 2, 8, D_MODEL  # small seq, full d_model so d_head = 64

    key = jax.random.PRNGKey(0)
    kx, kq, kk, kv = jax.random.split(key, 4)
    x = jax.random.normal(kx, (B, T, C), dtype=jnp.float32)
    # nn.Linear default init scale ~ 1/sqrt(fan_in); deterministic synthetic weights.
    wq = jax.random.normal(kq, (C, D_HEAD), dtype=jnp.float32) * (C ** -0.5)
    wk = jax.random.normal(kk, (C, D_HEAD), dtype=jnp.float32) * (C ** -0.5)
    wv = jax.random.normal(kv, (C, D_HEAD), dtype=jnp.float32) * (C ** -0.5)

    out = attention_head(x, wq, wk, wv)
    out = jax.block_until_ready(out)

    ref = _reference(x, wq, wk, wv)
    assert out.shape == (B, T, D_HEAD), out.shape
    # bf16 matmul inputs with f32 accumulation -> looser tolerance than pure f32.
    assert jnp.allclose(out, ref, atol=2e-2, rtol=2e-2), float(jnp.max(jnp.abs(out - ref)))

    print("KERNEL_OK")
</pallas_src>

<mosaic_0001>
module attributes {stable_mosaic.version = 11 : i64} {
  func.func @_attention_head_kernel(%arg0: i32, %arg1: memref<1x8x384xbf16, #tpu.memory_space<vmem>>, %arg2: memref<384x192xbf16, #tpu.memory_space<vmem>>, %arg3: memref<1x8x64xf32, #tpu.memory_space<vmem>>) attributes {dimension_semantics = [#tpu.dimension_semantics<parallel>], iteration_bounds = array<i64: 2>, scalar_prefetch = 0 : i64, scratch_operands = 0 : i64, tpu.core_type = #tpu.core_type<tc>, window_params = [{transform_indices = @transform_0, window_bounds = array<i64: 1, 8, 384>}, {pipeline_mode = #tpu.pipeline_mode<synchronous>, transform_indices = @transform_1, window_bounds = array<i64: 384, 192>}, {transform_indices = @transform_2, window_bounds = array<i64: 1, 8, 64>}]} {
    %c0 = arith.constant 0 : index
    %c0_0 = arith.constant 0 : index
    %c0_1 = arith.constant 0 : index
    %0 = vector.load %arg1[%c0, %c0_0, %c0_1] : memref<1x8x384xbf16, #tpu.memory_space<vmem>>, vector<1x8x384xbf16>
    %1 = vector.shape_cast %0 : vector<1x8x384xbf16> to vector<8x384xbf16>
    %c0_2 = arith.constant 0 : index
    %c0_3 = arith.constant 0 : index
    %2 = vector.load %arg2[%c0_2, %c0_3] : memref<384x192xbf16, #tpu.memory_space<vmem>>, vector<384x192xbf16>
    %cst = arith.constant dense<0.000000e+00> : vector<8x192xf32>
    %3 = tpu.matmul %1, %2, %cst {dimension_numbers = #tpu.dot_dimension_numbers<[1], [0], [0], [1], [0, 0, 1, 1], [], []>} : vector<8x384xbf16>, vector<384x192xbf16>, vector<8x192xf32> -> vector<8x192xf32>
    %4 = vector.shape_cast %3 : vector<8x192xf32> to vector<1x8x192xf32>
    %5 = vector.extract_strided_slice %4 {offsets = [0, 0, 0], sizes = [1, 8, 64], strides = [1, 1, 1]} : vector<1x8x192xf32> to vector<1x8x64xf32>
    %6 = vector.extract_strided_slice %4 {offsets = [0, 0, 64], sizes = [1, 8, 64], strides = [1, 1, 1]} : vector<1x8x192xf32> to vector<1x8x64xf32>
    %7 = vector.extract_strided_slice %4 {offsets = [0, 0, 128], sizes = [1, 8, 64], strides = [1, 1, 1]} : vector<1x8x192xf32> to vector<1x8x64xf32>
    %cst_4 = arith.constant 3.840000e+02 : f32
    %cst_5 = arith.constant -5.000000e-01 : f32
    %8 = math.powf %cst_4, %cst_5 : f32
    %9 = arith.truncf %5 : vector<1x8x64xf32> to vector<1x8x64xbf16>
    %10 = arith.truncf %6 : vector<1x8x64xf32> to vector<1x8x64xbf16>
    %cst_6 = arith.constant dense<0.000000e+00> : vector<1x8x8xf32>
    %11 = tpu.matmul %9, %10, %cst_6 {dimension_numbers = #tpu.dot_dimension_numbers<[2], [2], [1], [1], [0, 0, 0, 1, 1, 1], [0], [0]>} : vector<1x8x64xbf16>, vector<1x8x64xbf16>, vector<1x8x8xf32> -> vector<1x8x8xf32>
    %12 = vector.broadcast %8 : f32 to vector<1x8x8xf32>
    %13 = arith.mulf %11, %12 : vector<1x8x8xf32>
    %14 = tpu.iota {dimensions = array<i32: 0>} : vector<8x8xi32>
    %15 = tpu.iota {dimensions = array<i32: 1>} : vector<8x8xi32>
    %16 = arith.cmpi sle, %15, %14 : vector<8x8xi32>
    %17 = vector.shape_cast %16 : vector<8x8xi1> to vector<1x8x8xi1>
    %cst_7 = arith.constant -1.000000e+30 : f32
    %18 = vector.broadcast %cst_7 : f32 to vector<1x8x8xf32>
    %19 = arith.select %17, %13, %18 : vector<1x8x8xi1>, vector<1x8x8xf32>
    %cst_8 = arith.constant dense<0xFF800000> : vector<1x8xf32>
    %20 = vector.multi_reduction <maximumf>, %19, %cst_8 [2] : vector<1x8x8xf32> to vector<1x8xf32>
    %21 = vector.shape_cast %20 : vector<1x8xf32> to vector<1x8x1xf32>
    %22 = vector.broadcast %21 : vector<1x8x1xf32> to vector<1x8x8xf32>
    %23 = arith.subf %19, %22 : vector<1x8x8xf32>
    %24 = math.exp %23 : vector<1x8x8xf32>
    %cst_9 = arith.constant dense<0.000000e+00> : vector<1x8xf32>
    %25 = vector.multi_reduction <add>, %24, %cst_9 [2] : vector<1x8x8xf32> to vector<1x8xf32>
    %26 = vector.shape_cast %25 : vector<1x8xf32> to vector<1x8x1xf32>
    %27 = tpu.reciprocal %26 {approx = true} : vector<1x8x1xf32> -> vector<1x8x1xf32>
    %28 = vector.broadcast %27 : vector<1x8x1xf32> to vector<1x8x8xf32>
    %29 = arith.mulf %24, %28 : vector<1x8x8xf32>
    %30 = arith.truncf %29 : vector<1x8x8xf32> to vector<1x8x8xbf16>
    %31 = arith.truncf %7 : vector<1x8x64xf32> to vector<1x8x64xbf16>
    %cst_10 = arith.constant dense<0.000000e+00> : vector<1x8x64xf32>
    %32 = tpu.matmul %30, %31, %cst_10 {dimension_numbers = #tpu.dot_dimension_numbers<[2], [1], [1], [2], [0, 0, 0, 1, 1, 2], [0], [0]>} : vector<1x8x8xbf16>, vector<1x8x64xbf16>, vector<1x8x64xf32> -> vector<1x8x64xf32>
    %c0_11 = arith.constant 0 : index
    %c0_12 = arith.constant 0 : index
    %c0_13 = arith.constant 0 : index
    %33 = vector.load %arg3[%c0_11, %c0_12, %c0_13] : memref<1x8x64xf32, #tpu.memory_space<vmem>>, vector<1x8x64xf32>
    tpu.vector_store %arg3[%c0_11, %c0_12, %c0_13], %32 {strides = array<i32>} : memref<1x8x64xf32, #tpu.memory_space<vmem>>, vector<1x8x64xf32>,
    return
  }
  func.func @transform_0(%arg0: i32) -> (i32, i32, i32) {
    %c0_i32 = arith.constant 0 : i32
    %c0_i32_0 = arith.constant 0 : i32
    %c0_i32_1 = arith.constant 0 : i32
    return %arg0, %c0_i32, %c0_i32_0 : i32, i32, i32
  }
  func.func @transform_1(%arg0: i32) -> (i32, i32) {
    %c0_i32 = arith.constant 0 : i32
    %c0_i32_0 = arith.constant 0 : i32
    %c0_i32_1 = arith.constant 0 : i32
    return %c0_i32, %c0_i32_0 : i32, i32
  }
  func.func @transform_2(%arg0: i32) -> (i32, i32, i32) {
    %c0_i32 = arith.constant 0 : i32
    %c0_i32_0 = arith.constant 0 : i32
    %c0_i32_1 = arith.constant 0 : i32
    return %arg0, %c0_i32, %c0_i32_0 : i32, i32, i32
  }
}

</mosaic_0001>

<bundles_post_ra>
// kernel: tpu_custom_call.1
= control target key start
LH: loop header
LB: loop body
LE: loop exit
PB: predicated region body
PF: predicated region fallthrough
CT: control target
= control target key end

     0   :  { %7 = vsyncpa [#allocation3], 0  ;;  %s1259_s0 = inlined_call_operand.vmem [shape: bf16[2,8,384], index: 0, kind: input, shape index: {}]   ;;  %s1260_s1 = inlined_call_operand.vmem [shape: bf16[384,192], index: 1, kind: input, shape index: {}]   ;;  %s1261_s2 = inlined_call_operand.hbm [shape: f32[2,8,64], index: 2, kind: output, shape index: {}]  }
   0x1   :  { %9 = vsyncpa [#allocation3 + $0x1], 0  ;;  %s1007_s9 = smov 0   ;;  %s1009_s10 = smov 0  }
   0x2   :  { %s1011_s11 = smov 0   ;;  %s1013_s12 = smov 0  }
   0x3 LB: > { %s1028_s13 = sadd.s32 4294967295, %s985_s12   ;;  %s719_s14 = sadd.s32 4294967294, %s985_s12   ;;  %s985_s12 = sphi %s1013_s12, %s1267_s12   ;;  %s981_s11 = sphi %s1011_s11, %s1266_s11   ;;  %s977_s10 = sphi %s1009_s10, %s1265_s10   ;;  %s973_s9 = sphi %s1007_s9, %s1264_s9  }
   0x4   : > { %s1032_s15 = sadd.s32 1, %s985_s12   ;;  %s69_s16 = sadd.s32 1, %s981_s11 }
   0x5   : > { %s66_s17 = ssub.s32 %s985_s12, %s1032_s15  ;;  %p79_p0 = scmp.ne.s32.totalorder %s981_s11, %s977_s10 }
   0x6   : > { %p67_p1 = scmp.eq.s32.totalorder %s66_s17, 0  ;;  %p80_p2 = scmp.eq.s32.totalorder %s1028_s13, 1 }
   0x7   : > { %p85_p3 = scmp.ne.s32.totalorder %s977_s10, %s973_s9  ;;  %p86_p4 = scmp.eq.s32.totalorder %s719_s14, 1 }
   0x8   : > { %s1043_s18 = scalar_select %p67_p1, %s981_s11, %s69_s16  }
   0x9   : > { %p1045_p5 = por %p80_p2, %p79_p0  ;;  %p1049_p6 = por %p86_p4, %p85_p3 }
   0xa   : > { %p722_p7 = scmp.ge.s32.totalorder %s985_s12, 1  ;;  %p115_p8 = scmp.lt.s32.totalorder %s985_s12, 3 }
   0xc   : > { %p116_p9 = pnand %p722_p7, %p115_p8 }
   0xd   : > { %v844_v0 = vld [vmem:[%s1260_s1 + $0x4] ss:$8 sps:$4 sm:$0xff] (!%p116_p9)   ;;  %v846_v1 = vld [vmem:[%s1260_s1] ss:$8 sps:$4 sm:$0xff] (!%p116_p9)   ;;  %v987_v2 = vmov (!%p116_p9), 0   ;;  %p137_p10 = scmp.lt.s32.totalorder (!%p116_p9), %s1028_s13, 1 }
   0xe   : > { %119 = sbr.rel (%p116_p9) target bundleno = 1175 (0x497), region = 28  ;;  %517 = vmatprep.mubr.bf16.mxu1 (!%p116_p9), %v987_v2  ;;  %444 = vmatprep.subr.bf16.mxu0 (!%p116_p9), %v844_v0  ;;  %v847_v3 = vld [vmem:[%s1260_s1 + $0x14] ss:$8 sps:$4 sm:$0xff] (!%p116_p9)   ;;  %v849_v4 = vld [vmem:[%s1260_s1 + $0x10] ss:$8 sps:$4 sm:$0xff] (!%p116_p9)   ;;  %v988_v57 = vmov (!%p116_p9), 0.0  }
   0xf   : > { %445 = vmatpush1.bf16.msra.mxu0 (!%p116_p9), %v846_v1  ;;  %v850_v5 = vld [vmem:[%s1260_s1 + $0x24] ss:$8 sps:$4 sm:$0xff] (!%p116_p9)   ;;  %v852_v6 = vld [vmem:[%s1260_s1 + $0x20] ss:$8 sps:$4 sm:$0xff] (!%p116_p9)   ;;  %v853_v7 = vld [vmem:[%s1260_s1 + $0x34] ss:$8 sps:$4 sm:$0xff] (!%p116_p9)  }
  0x10   : > { %446 = vmatprep.subr.bf16.mxu0 (!%p116_p9), %v847_v3  ;;  %v855_v8 = vld [vmem:[%s1260_s1 + $0x30] ss:$8 sps:$4 sm:$0xff] (!%p116_p9)   ;;  %v868_v9 = vld [vmem:[%s1260_s1 + $0x104] ss:$8 sps:$4 sm:$0xff] (!%p116_p9)   ;;  %v870_v10 = vld [vmem:[%s1260_s1 + $0x100] ss:$8 sps:$4 sm:$0xff] (!%p116_p9)  }
  0x11   : > { %v856_v11 = vld [vmem:[%s1260_s1 + $0x44] ss:$8 sps:$4 sm:$0xff] (!%p116_p9)   ;;  %485 = vmatprep.subr.bf16.mxu1 (!%p116_p9), %v868_v9  ;;  %v874_v12 = vld [vmem:[%s1260_s1 + $0x114] ss:$8 sps:$4 sm:$0xff] (!%p116_p9)   ;;  %v876_v13 = vld [vmem:[%s1260_s1 + $0x110] ss:$8 sps:$4 sm:$0xff] (!%p116_p9)  }
  0x12   : > { %486 = vmatpush1.bf16.msra.mxu1 (!%p116_p9), %v870_v10  ;;  %v858_v14 = vld [vmem:[%s1260_s1 + $0x40] ss:$8 sps:$4 sm:$0xff] (!%p116_p9)   ;;  %v859_v15 = vld [vmem:[%s1260_s1 + $0x54] ss:$8 sps:$4 sm:$0xff] (!%p116_p9)   ;;  %v880_v16 = vld [vmem:[%s1260_s1 + $0x124] ss:$8 sps:$4 sm:$0xff] (!%p116_p9)  }
  0x13   : > { %447 = vmatpush1.bf16.msra.mxu0 (!%p116_p9), %v849_v4  ;;  %487 = vmatprep.subr.bf16.mxu1 (!%p116_p9), %v874_v12  ;;  %v882_v17 = vld [vmem:[%s1260_s1 + $0x120] ss:$8 sps:$4 sm:$0xff] (!%p116_p9)   ;;  %v861_v18 = vld [vmem:[%s1260_s1 + $0x50] ss:$8 sps:$4 sm:$0xff] (!%p116_p9)   ;;  %v886_v19 = vld [vmem:[%s1260_s1 + $0x134] ss:$8 sps:$4 sm:$0xff] (!%p116_p9)  }
  0x14   : > { %448 = vmatprep.subr.bf16.mxu0 (!%p116_p9), %v850_v5  ;;  %v862_v20 = vld [vmem:[%s1260_s1 + $0x64] ss:$8 sps:$4 sm:$0xff] (!%p116_p9)   ;;  %v888_v21 = vld [vmem:[%s1260_s1 + $0x130] ss:$8 sps:$4 sm:$0xff] (!%p116_p9)   ;;  %v864_v22 = vld [vmem:[%s1260_s1 + $0x60] ss:$8 sps:$4 sm:$0xff] (!%p116_p9)   ;;  %v578_v5 = vlaneseq (!%p116_p9) }
  0x15   : > { %s138_s23 = scalar_select %p137_p10, %s1028_s13, 1  ;;  %v892_v23 = vld [vmem:[%s1260_s1 + $0x144] ss:$8 sps:$4 sm:$0xff]   ;;  %v865_v24 = vld [vmem:[%s1260_s1 + $0x74] ss:$8 sps:$4 sm:$0xff]   ;;  %vm989_vm0 = vmmov 0  }
  0x16   : > { %488 = vmatpush1.bf16.msra.mxu1 %v876_v13  ;;  %v894_v25 = vld [vmem:[%s1260_s1 + $0x140] ss:$8 sps:$4 sm:$0xff]   ;;  %v867_v26 = vld [vmem:[%s1260_s1 + $0x70] ss:$8 sps:$4 sm:$0xff]   ;;  %v898_v27 = vld [vmem:[%s1260_s1 + $0x154] ss:$8 sps:$4 sm:$0xff]  }
  0x17   : > { %449 = vmatpush1.bf16.msra.mxu0 %v852_v6  ;;  %489 = vmatprep.subr.bf16.mxu1 %v880_v16  ;;  %s800_s4 = smul.u32 12, %s138_s23  ;;  %v871_v28 = vld [vmem:[%s1260_s1 + $0x84] ss:$8 sps:$4 sm:$0xff]   ;;  %v900_v29 = vld [vmem:[%s1260_s1 + $0x150] ss:$8 sps:$4 sm:$0xff]   ;;  %s990_s28 = smov 64  }
  0x18   : > { %450 = vmatprep.subr.bf16.mxu0 %v853_v7  ;;  %v873_v30 = vld [vmem:[%s1260_s1 + $0x80] ss:$8 sps:$4 sm:$0xff]   ;;  %v904_v31 = vld [vmem:[%s1260_s1 + $0x164] ss:$8 sps:$4 sm:$0xff]   ;;  %v877_v32 = vld [vmem:[%s1260_s1 + $0x94] ss:$8 sps:$4 sm:$0xff]  }
  0x19   : > { %s141_s24 = scalar_lea.vmem %s1259_s0, %s800_s4  ;;  %v906_v35 = vld [vmem:[%s1260_s1 + $0x160] ss:$8 sps:$4 sm:$0xff]   ;;  %v879_v36 = vld [vmem:[%s1260_s1 + $0x90] ss:$8 sps:$4 sm:$0xff]   ;;  %v910_v37 = vld [vmem:[%s1260_s1 + $0x174] ss:$8 sps:$4 sm:$0xff]  }
  0x1a   : > { %490 = vmatpush1.bf16.msra.mxu1 %v882_v17  ;;  %v143_v33 = vld [vmem:[%s141_s24] sm:$0xff]  ;;  %v912_v39 = vld [vmem:[%s1260_s1 + $0x170] ss:$8 sps:$4 sm:$0xff]   ;;  %v889_v41 = vld [vmem:[%s1260_s1 + $0xb4] ss:$8 sps:$4 sm:$0xff]   ;;  %vm530_vm1 = vcmask 523264  }
  0x1b   : > { %451 = vmatpush1.bf16.msra.mxu0 %v855_v8  ;;  %491 = vmatprep.subr.bf16.mxu1 %v886_v19  ;;  %v726_v34 = vcombine.high %v143_v33, %v143_v33  ;;  %v883_v38 = vld [vmem:[%s1260_s1 + $0xa4] ss:$8 sps:$4 sm:$0xff]   ;;  %v885_v40 = vld [vmem:[%s1260_s1 + $0xa0] ss:$8 sps:$4 sm:$0xff]   ;;  %v891_v43 = vld [vmem:[%s1260_s1 + $0xb0] ss:$8 sps:$4 sm:$0xff]   ;;  %v725_v52 = vcombine.low %v143_v33, %v143_v33 }
  0x1c   : > { %452 = vmatprep.subr.bf16.mxu0 %v856_v11  ;;  %v916_v42 = vld [vmem:[%s141_s24 + $0x8] ss:$0 sps:$4 sm:$0xff]   ;;  %v895_v44 = vld [vmem:[%s1260_s1 + $0xc4] ss:$8 sps:$4 sm:$0xff]   ;;  %v901_v46 = vld [vmem:[%s1260_s1 + $0xd4] ss:$8 sps:$4 sm:$0xff]  }
  0x1d   : > { %476 = vmatprep.mubr.bf16.mxu0 %v726_v34  ;;  %v897_v45 = vld [vmem:[%s1260_s1 + $0xc0] ss:$8 sps:$4 sm:$0xff]   ;;  %v903_v47 = vld [vmem:[%s1260_s1 + $0xd0] ss:$8 sps:$4 sm:$0xff]   ;;  %v907_v48 = vld [vmem:[%s1260_s1 + $0xe4] ss:$8 sps:$4 sm:$0xff]  }
  0x1e   : > { %492 = vmatpush1.bf16.msra.mxu1 %v888_v21  ;;  %v909_v49 = vld [vmem:[%s1260_s1 + $0xe0] ss:$8 sps:$4 sm:$0xff]   ;;  %v913_v50 = vld [vmem:[%s1260_s1 + $0xf4] ss:$8 sps:$4 sm:$0xff]   ;;  %v915_v51 = vld [vmem:[%s1260_s1 + $0xf0] ss:$8 sps:$4 sm:$0xff]  }
  0x1f   : > { %453 = vmatpush1.bf16.msra.mxu0 %v858_v14  ;;  %493 = vmatprep.subr.bf16.mxu1 %v892_v23  ;;  %vm601_vm2 = vcmask 1043456   ;;  %v579_v6 = vshrl.u32 %v578_v5, 7  ;;  %v581_v7 = vand.u32 127, %v578_v5  ;;  %vm584_vm4 = vcmask 64512   ;;  %s134_s29 = sand.u32 1, %s977_s10   ;;  %s779_s3 = sshll.u32 %s1028_s13, 7 }
  0x20   : > { %454 = vmatprep.subr.bf16.mxu0 %v859_v15  ;;  %s723_s30 = sshll.u32 %s134_s29, 3  ;;  %s1216_s24 = scalar_lea.hbm %s1261_s2, %s779_s3 }
  0x21   : > { %vm582_vm3 = vcmp.le.s32.totalorder %v581_v7, %v579_v6  ;;  %s136_s5 = scalar_lea.vmem [#allocation2], %s723_s30  ;;  %s647_s8 = scalar_lea.sflag [#allocation3], %s134_s29 }
  0x22   : > { %494 = vmatpush1.bf16.msra.mxu1 %v894_v25  ;;  %s660_s4 = sshll.u32 %s136_s5, 4  ;;  %s991_s13 = smov [#allocation2]   ;;  %s1218_s4 = int_to_ptr.vmem [resolvable:$true] %s660_s4 }
  0x23   : > { %455 = vmatpush1.bf16.msra.mxu0 %v861_v18  ;;  %495 = vmatprep.subr.bf16.mxu1 %v898_v27  ;;  %s923_s14 = scalar_lea.vmem %s1218_s4, 128  ;;  %s927_s16 = sshll.u32 %s991_s13, 4  ;;  %s928_s16 = int_to_ptr.vmem [resolvable:$false] %s927_s16 }
  0x24   : > { %456 = vmatprep.subr.bf16.mxu0 %v862_v20  ;;  %p924_p11 = scmp.ne.s32.totalorder %s1218_s4, %s923_s14  ;;  %s929_s17 = scalar_lea.vmem %s928_s16, 256 }
  0x25   : > { %p930_p0 = scmp.lt.s32.totalorder %s1218_s4, %s928_s16  ;;  %p931_p1 = scmp.lt.s32.totalorder %s929_s17, %s923_s14 }
  0x26   : > { %496 = vmatpush1.bf16.msra.mxu1 %v900_v29  ;;  %p925_p12 = pnand %p924_p11, %p1045_p5 }
  0x27   : > { %457 = vmatpush1.bf16.msra.mxu0 %v864_v22  ;;  %497 = vmatprep.subr.bf16.mxu1 %v904_v31  ;;  %p932_p2 = por %p931_p1, %p930_p0 }
  0x28   : > { %458 = vmatprep.subr.bf16.mxu0 %v865_v24  ;;  %p926_p13 = pneg %p925_p12 }
  0x2a   : > { %498 = vmatpush1.bf16.msra.mxu1 %v906_v35  ;;  %p933_p3 = pnand %p932_p2, %p926_p13 }
  0x2b   : > { %459 = vmatpush1.bf16.msra.mxu0 %v867_v26  ;;  %499 = vmatprep.subr.bf16.mxu1 %v910_v37 }
  0x2c   : > { %460 = vmatprep.subr.bf16.mxu0 %v871_v28 }
  0x2e   : > { %500 = vmatpush1.bf16.msra.mxu1 %v912_v39 }
  0x2f   : > { %461 = vmatpush1.bf16.msra.mxu0 %v873_v30  ;;  %786 = vmatprep.subr.bf16.mxu1 %v988_v57 }
  0x30   : > { %462 = vmatprep.subr.bf16.mxu0 %v877_v32 }
  0x31   : > { %518 = vmatmul.mubr.bf16.vlgmr.msra.gmra.mrb[0].mxu1 %v916_v42 }
  0x32   : > { %788 = vmatprep.mubr.msk.bf16.mxu1 %vm989_vm0, %v988_v57 }
  0x33   : > { %463 = vmatpush1.bf16.msra.mxu0 %v879_v36 }
  0x34   : > { %464 = vmatprep.subr.bf16.mxu0 %v883_v38 }
  0x37   : > { %465 = vmatpush1.bf16.msra.mxu0 %v885_v40 }
  0x38   : > { %466 = vmatprep.subr.bf16.mxu0 %v889_v41 }
  0x3b   : > { %467 = vmatpush1.bf16.msra.mxu0 %v891_v43 }
  0x3c   : > { %468 = vmatprep.subr.bf16.mxu0 %v895_v44 }
  0x3f   : > { %469 = vmatpush1.bf16.msra.mxu0 %v897_v45 }
  0x40   : > { %470 = vmatprep.subr.bf16.mxu0 %v901_v46 }
  0x43   : > { %471 = vmatpush1.bf16.msra.mxu0 %v903_v47 }
  0x44   : > { %472 = vmatprep.subr.bf16.mxu0 %v907_v48 }
  0x47   : > { %473 = vmatpush1.bf16.msra.mxu0 %v909_v49 }
  0x48   : > { %474 = vmatprep.subr.bf16.mxu0 %v913_v50 }
  0x4b   : > { %475 = vmatpush1.bf16.msra.mxu0 %v915_v51 }
  0x4e   : > { %477 = vmatmul.mubr.bf16.vlgmr.msra.gmra.mrb[0].mxu0 %v725_v52 }
 0x104   : > { %v519_v53 = vpop.f32.mrb[0].mxu1 }
 0x105   : > { %v521_v54 = vpop.f32.mrb[1].mxu1 }
 0x106   : > { %v523_v55 = vpop.f32.mrb[2].mxu1 }
 0x107   : > { %v524_v56 = vpop.f32.mrb[3].mxu1 }
 0x121   : > { %v478_v58 = vpop.f32.mrb[0].mxu0 }
 0x122   : > { %v520_v59 = vadd.f32 %v519_v53, %v478_v58  ;;  %v480_v60 = vpop.f32.mrb[1].mxu0 }
 0x123   : > { %v522_v61 = vadd.f32 %v521_v54, %v480_v60  ;;  %v482_v62 = vpop.f32.mrb[2].mxu0 }
 0x124   : > { %v526_v63 = vpack.c.bf16 %v520_v59, %v520_v59  ;;  %v483_v0 = vpop.f32.mrb[3].mxu0 }
 0x125   : > { %v597_v3 = vpack.c.bf16 %v522_v61, %v522_v61 }
 0x126   : > { %528 = vrot.lane.b32.xlu0 %v526_v63, %s990_s28 }
 0x127   : > { %v603_v4 = vsel %vm601_vm2, %v597_v3, 0 }
 0x198   : > { %v529_v1 = vpop.permute.xlu0 %528 }
 0x199   : > { %v535_v2 = vsel %vm530_vm1, %v529_v1, 0 }
 0x19a   : > { %787 = vmatpush3.bf16.xpose.msra.mxu1 %v535_v2 }
 0x19b   : > { %792 = vmatprep.subr.bf16.mxu1 %v988_v57 }
 0x1a1   : > { %789 = vmatmul.mubr.msk.bf16.vlgmr.msra.gmra.mrb[4].mxu1 %vm530_vm1, %v526_v63 }
 0x1a2   : > { %793 = vmatpush3.bf16.msra.mxu1 %v603_v4  ;;  %794 = vmatprep.mubr.msk.bf16.mxu1 %vm989_vm0, %v988_v57 }
 0x274   : > { %v571_v8 = vpop.f32.mrb[4].mxu1 }
 0x275   : > { %v577_v9 = vmul.f32 0.05103104, %v571_v8  ;;  %v790_v10 = vpop.f32.mrb[5].mxu1 }
 0x276   : > { %v574_v11 = vpop.f32.mrb[6].mxu1 }
 0x277   : > { %v791_v12 = vpop.f32.mrb[7].mxu1  ;;  %v583_v13 = vsel %vm582_vm3, %v577_v9, -1e+30 }
 0x278   : > { %v585_v14 = vsel %vm584_vm4, %v583_v13, -inf }
 0x279   : > { %586 = vmax.xlane.f32.xlu0 %v585_v14 }
 0x306   : > { %v587_v15 = vpop.xlane.xlu0 %586 }
 0x307   : > { %v588_v16 = vsub.f32 %v583_v13, %v587_v15 }
 0x309   : > { %v589_v17 = vmul.f32 1.442695, %v588_v16 }
 0x30b   : > { %919 = vpow2.f32 %v589_v17 }
 0x315   : > { %v920_v18 = vpop.eup %919 }
 0x316   : > { %v591_v19 = vsel %vm584_vm4, %v920_v18, 0.0 }
 0x317   : > { %592 = vadd.xlane.f32.xlu1 %v591_v19 }
 0x3a4   : > { %v593_v20 = vpop.xlane.xlu1 %592 }
 0x3a5   : > { %921 = vrcp.f32 %v593_v20 }
 0x3af   : > { %v922_v21 = vpop.eup %921 }
 0x3b0   : > { %v595_v22 = vmul.f32 %v922_v21, %v920_v18 }
 0x3b2   : > { %v596_v23 = vpack.c.bf16 %v595_v22, %v595_v22 }
 0x3b4   : > { %795 = vmatmul.mubr.msk.bf16.vlgmr.msra.gmra.mrb[8].mxu1 %vm584_vm4, %v596_v23 }
 0x487   : > { %v639_v24 = vpop.f32.mrb[8].mxu1 }
 0x488   : > { %645 = vst.msk [vmem:[%s136_s5] sm:$0xff] %vm530_vm1, %v639_v24  ;;  %v796_v25 = vpop.f32.mrb[9].mxu1 }
 0x489   : > { %v642_v26 = vpop.f32.mrb[10].mxu1 }
 0x48a   : > { %936 = shalt.err (!%p933_p3)
}
 0x48b   : > { %s937_s21 = scalar_lea.hbm %s1216_s24, 128  ;;  %s941_s25 = scalar_lea.hbm %s1261_s2, 256 }
 0x48c   : > { %p938_p4 = scmp.ne.s32.totalorder %s1216_s24, %s937_s21  ;;  %p942_p9 = scmp.lt.u32.totalorder %s1216_s24, %s1261_s2 }
 0x48d   : > { %p943_p10 = scmp.lt.u32.totalorder %s941_s25, %s937_s21  ;;  %p945_p12 = scmp.lt.u32.totalorder %s937_s21, %s1216_s24 }
 0x48e   : > { %p939_p7 = pnand %p938_p4, %p1045_p5 }
 0x48f   : > { %p944_p11 = por %p943_p10, %p942_p9 }
 0x490   : > { %p940_p8 = pneg %p939_p7 }
 0x491   : > { %p946_p13 = por %p945_p12, %p944_p11 }
 0x493   : > { %p947_p0 = pnand %p946_p13, %p940_p8 }
 0x495   : > { %950 = shalt.err (!%p947_p0)
}
 0x496   : > { %801 = dma.vmem_to_hbm [thread:$0]  (%p1045_p5), %s1218_s4, 128, %s1216_s24, %s647_s8   ;;  %v797_v27 = vpop.f32.mrb[11].mxu1 }
 0x497 PF: > { %p807_p1 = scmp.ge.s32.totalorder %s985_s12, 2  ;;  %s672_s28 = sand.u32 1, %s973_s9  }
 0x498   : > { %s673_s29 = scalar_lea.sflag [#allocation3], %s672_s28 }
 0x499   : > { %p804_p2 = pnand %p807_p1, %p1049_p6 }
 0x49b   : > { %968 = dma.done.wait (!%p804_p2), %s673_s29, 128  }
 0x49c   : > { %970 = vsyncadd (!%p804_p2), %s673_s29, 4294967168  ;;  %p12_p3 = scmp.ge.s32.totalorder %s1032_s15, 4   ;;  %s1264_s9 = smov %s977_s10 }
 0x49d   : > { %s1265_s10 = smov %s981_s11  ;;  %s1266_s11 = smov %s1043_s18 }
 0x49e   : > { %s1267_s12 = smov %s1032_s15  ;;  %14 = sbr.rel (!%p12_p3) target bundleno = 3 (0x3), region = 63 }
 0x4a5   :  { %678 = vsyncpa [#allocation3], 1 }
 0x4a6   :  { %680 = vsyncpa [#allocation3 + $0x1], 1 }

</bundles_post_ra>
